<compile_context>
chip_gen: v5e
topology: v5e:2x2
jax: 0.10.0
libtpu: 0.0.40
codegen_flags: <defaults>
</compile_context>

<pallas_src>
import jax
import jax.numpy as jnp
from jax.experimental import pallas as pl
from jax.experimental.pallas import tpu as pltpu


# Rows at which tiled mem-bound kernels reach ~85% of HBM roofline.
_GOOD_TILE_S = 512


def _pos_embed_kernel(w_ref, out_ref):
    # w_ref:   (TILE_S, TILE_D) tile of W_pos   (or (1, seq*d_model) flattened)
    # out_ref: (B_TILE, TILE_S, TILE_D) output slab
    # Pure vreg replication over the leading batch dim — no cross-lane
    # movement, no extra VALU work; vld/vst + DMA are the only busy resources.
    out_ref[...] = jnp.broadcast_to(w_ref[...][None, :, :], out_ref.shape)


def _vmem_budget(user_budget):
    """Generation-aware VMEM budget; vmem_limit_bytes is tied to it."""
    if user_budget is not None:
        return user_budget, user_budget
    budget = 48 * 1024 * 1024          # safe everywhere (v7x: 64 MiB per TC)
    try:
        kind = jax.devices()[0].device_kind.lower()
        if any(tag in kind for tag in ("v4", "v5", "v6")):
            budget = 96 * 1024 * 1024  # these chips have 128 MiB physical VMEM
    except Exception:
        pass                           # unknown device -> stay conservative
    return budget, budget


def _choose_tiles(batch, seq, d_model, itemsize, budget):
    """Pick (b_tile, tile_s, tile_d).

    Double-buffered footprint 2*(b_tile + 1)*tile_s*tile_d*itemsize <= budget.
    Block-dim rules: tile_s multiple of 8 or == seq; tile_d multiple of 128 or
    == d_model.  b_tile is a leading (non-layout) dim, unconstrained.
    """
    # (1) Full batch folded into the output block, full d_model.
    per_row = 2 * (batch + 1) * d_model * itemsize
    max_s_full_batch = budget // per_row
    if max_s_full_batch >= min(seq, _GOOD_TILE_S):
        if max_s_full_batch >= seq:
            tile_s = seq
            # Big arrays: keep >= 2 seq blocks so both TCs / the pipeline have
            # work to split & overlap.
            if seq >= 2 * _GOOD_TILE_S:
                tile_s = ((seq + 15) // 16) * 8       # ~seq/2, multiple of 8
        else:
            tile_s = (max_s_full_batch // 8) * 8
        return batch, tile_s, d_model

    # (2) Large-batch regime: batch moves to the innermost grid axis; keep the
    #     seq tile big so each output DMA stays a large contiguous slab.
    tile_s = seq if seq <= _GOOD_TILE_S else _GOOD_TILE_S
    slab = 2 * tile_s * d_model * itemsize            # one batch slice (dbl-buf)
    if 2 * slab <= budget:                            # W_pos tile + >=1 slice
        b_tile = min(batch, (budget - slab) // slab)
        return b_tile, tile_s, d_model

    # (3) Even one (tile_s, d_model) slice is too big: shrink the seq tile.
    max_s = budget // (4 * d_model * itemsize)
    if max_s >= 8:
        return 1, min(seq, (max_s // 8) * 8), d_model

    # (4) d_model itself too wide for an 8-row slice: tile d_model as well.
    tile_s = min(seq, 8)
    tile_d = (budget // (4 * tile_s * itemsize) // 128) * 128
    tile_d = max(128, min(tile_d, d_model))
    # TODO(synk): if even a (1, 8, 128) slab exceeds the budget nothing more
    # can be tiled; unreachable for realistic budgets.
    return 1, tile_s, tile_d


def pos_embed_scale(W_pos: jax.Array, tokens: jax.Array,
                    *, vmem_budget_bytes: int | None = None) -> jax.Array:
    """Pallas implementation of PosEmbedScale.forward.

    Args:
      W_pos: (n_ctx, d_model) positional embedding table (already the
             concatenation of the old + newly-initialized columns).
      tokens: (batch, seq) integer token ids (only the shape is used, exactly
              like the PyTorch module).

    Returns:
      (batch, seq, d_model) positional embeddings, dtype of W_pos.
    """
    batch, seq = tokens.shape
    n_ctx, d_model = W_pos.shape
    assert seq <= n_ctx, "sequence length exceeds n_ctx"

    itemsize = jnp.dtype(W_pos.dtype).itemsize
    budget, vmem_limit = _vmem_budget(vmem_budget_bytes)

    flat = seq * d_model
    # Lane-density guard: d_model not a multiple of 128 would force masked
    # vst.msk partial stores on every row.  Present the output as
    # (batch, 1, seq*d_model) instead when the full flattened row fits VMEM.
    use_flat = (d_model % 128 != 0) and (4 * flat * itemsize <= budget)

    if use_flat:
        w = W_pos[:seq].reshape(1, flat)              # contiguous -> free reshape
        b_tile = min(batch, max(1, (budget - 2 * flat * itemsize)
                                // (2 * flat * itemsize)))
        grid = (pl.cdiv(batch, b_tile),)
        in_spec = pl.BlockSpec((1, flat), lambda b: (0, 0))
        out_spec = pl.BlockSpec((b_tile, 1, flat), lambda b: (b, 0, 0))
        out_shape = jax.ShapeDtypeStruct((batch, 1, flat), W_pos.dtype)
        # Sequential batch axis: W_pos block index never changes -> fetched once.
        dim_sem = ("arbitrary",)
    else:
        w = W_pos[:seq]
        b_tile, tile_s, tile_d = _choose_tiles(batch, seq, d_model, itemsize,
                                               budget)
        # Batch is the INNERMOST grid axis and W_pos's index_map ignores it, so
        # the resident W_pos tile is reused across the inner batch loop.
        grid = (pl.cdiv(seq, tile_s), pl.cdiv(d_model, tile_d),
                pl.cdiv(batch, b_tile))
        in_spec = pl.BlockSpec((tile_s, tile_d), lambda s, d, b: (s, d))
        out_spec = pl.BlockSpec((b_tile, tile_s, tile_d),
                                lambda s, d, b: (b, s, d))
        out_shape = jax.ShapeDtypeStruct((batch, seq, d_model), W_pos.dtype)
        dim_sem = ("parallel", "parallel", "arbitrary")

    # Read W_pos[:seq] once + write the full broadcast output.
    bytes_accessed = (seq * d_model + batch * seq * d_model) * itemsize

    out = pl.pallas_call(
        _pos_embed_kernel,
        out_shape=out_shape,
        grid_spec=pltpu.PrefetchScalarGridSpec(
            num_scalar_prefetch=0,
            grid=grid,
            in_specs=[in_spec],
            out_specs=out_spec,
        ),
        compiler_params=pltpu.CompilerParams(
            dimension_semantics=dim_sem,
            # Derived from the same budget the tile chooser used, so a
            # caller-raised budget can never exceed the compiler limit.
            vmem_limit_bytes=vmem_limit,
        ),
        cost_estimate=pl.CostEstimate(
            flops=0, transcendentals=0, bytes_accessed=bytes_accessed),
    )(w)

    return out.reshape(batch, seq, d_model)


def build_w_pos(n_ctx: int, d_model_old: int, d_model_new: int,
                init_range: float, key: jax.Array) -> jax.Array:
    """Deterministic synthetic construction mirroring PosEmbedScale.__init__."""
    k_old, k_new = jax.random.split(key)
    w_pos_old = jax.random.normal(k_old, (n_ctx, d_model_old),
                                  jnp.float32) * init_range
    w_pos_new = jax.random.normal(
        k_new, (n_ctx, d_model_new - d_model_old), jnp.float32) * init_range
    return jnp.concatenate([w_pos_old, w_pos_new], axis=1)


if __name__ == "__main__":
    key = jax.random.PRNGKey(0)
    k_w, k_tok, k_w2 = jax.random.split(key, 3)

    # --- Case 1: shapes consistent with the module (batch=2, seq=8,
    #     n_ctx=16, old d_model=16, scaled-up d_model=32).  d_model=32 is not
    #     a multiple of 128 -> exercises the lane-dense flattened path.
    batch, seq = 2, 8
    n_ctx, d_model_old, d_model_new = 16, 16, 32
    W_pos = build_w_pos(n_ctx, d_model_old, d_model_new, 0.02, k_w)
    tokens = jax.random.randint(k_tok, (batch, seq), 0, 50257, dtype=jnp.int32)

    out = jax.block_until_ready(pos_embed_scale(W_pos, tokens))
    ref = jnp.broadcast_to(W_pos[:seq][None], (batch, seq, d_model_new))
    assert out.shape == (batch, seq, d_model_new)
    assert out.dtype == jnp.float32
    assert bool(jnp.allclose(out, ref)), "mismatch vs reference (flat path)"

    # --- Case 2: d_model multiple of 128 -> exercises the generic tiled path
    #     (batch folded into the output block, batch axis innermost in grid).
    batch2, seq2, d2 = 2, 16, 256
    W_pos2 = jax.random.normal(k_w2, (32, d2), jnp.float32) * 0.02
    tokens2 = jnp.zeros((batch2, seq2), jnp.int32)

    out2 = jax.block_until_ready(pos_embed_scale(W_pos2, tokens2))
    ref2 = jnp.broadcast_to(W_pos2[:seq2][None], (batch2, seq2, d2))
    assert bool(jnp.allclose(out2, ref2)), "mismatch vs reference (tiled path)"

    print("KERNEL_OK")
</pallas_src>

<mosaic_0001>
module attributes {stable_mosaic.version = 11 : i64} {
  func.func @_pos_embed_kernel(%arg0: i32, %arg1: memref<1x256xf32, #tpu.memory_space<vmem>>, %arg2: memref<2x1x256xf32, #tpu.memory_space<vmem>>) attributes {dimension_semantics = [#tpu.dimension_semantics<arbitrary>], iteration_bounds = array<i64: 1>, scalar_prefetch = 0 : i64, scratch_operands = 0 : i64, tpu.core_type = #tpu.core_type<tc>, window_params = [{pipeline_mode = #tpu.pipeline_mode<synchronous>, transform_indices = @transform_0, window_bounds = array<i64: 1, 256>}, {transform_indices = @transform_1, window_bounds = array<i64: 2, 1, 256>}]} {
    %c0 = arith.constant 0 : index
    %c0_0 = arith.constant 0 : index
    %0 = vector.load %arg1[%c0, %c0_0] : memref<1x256xf32, #tpu.memory_space<vmem>>, vector<1x256xf32>
    %1 = vector.shape_cast %0 : vector<1x256xf32> to vector<1x1x256xf32>
    %2 = vector.shape_cast %1 : vector<1x1x256xf32> to vector<1x1x256xf32>
    %3 = vector.broadcast %2 : vector<1x1x256xf32> to vector<2x1x256xf32>
    %c0_1 = arith.constant 0 : index
    %c0_2 = arith.constant 0 : index
    %c0_3 = arith.constant 0 : index
    %4 = vector.load %arg2[%c0_1, %c0_2, %c0_3] : memref<2x1x256xf32, #tpu.memory_space<vmem>>, vector<2x1x256xf32>
    tpu.vector_store %arg2[%c0_1, %c0_2, %c0_3], %3 {strides = array<i32>} : memref<2x1x256xf32, #tpu.memory_space<vmem>>, vector<2x1x256xf32>,
    return
  }
  func.func @transform_0(%arg0: i32) -> (i32, i32) {
    %c0_i32 = arith.constant 0 : i32
    %c0_i32_0 = arith.constant 0 : i32
    %c0_i32_1 = arith.constant 0 : i32
    return %c0_i32, %c0_i32_0 : i32, i32
  }
  func.func @transform_1(%arg0: i32) -> (i32, i32, i32) {
    %c0_i32 = arith.constant 0 : i32
    %c0_i32_0 = arith.constant 0 : i32
    %c0_i32_1 = arith.constant 0 : i32
    return %arg0, %c0_i32, %c0_i32_0 : i32, i32, i32
  }
}

</mosaic_0001>

<bundles_post_ra>
// kernel: tpu_custom_call.1
= control target key start
LH: loop header
LB: loop body
LE: loop exit
PB: predicated region body
PF: predicated region fallthrough
CT: control target
= control target key end

     0   :  { %6 = vsyncpa [#allocation3], 0  ;;  %s125_s0 = inlined_call_operand.hbm [shape: f32[1,256], index: 0, kind: input, shape index: {}]   ;;  %s126_s1 = inlined_call_operand.hbm [shape: f32[2,1,256], index: 1, kind: output, shape index: {}]  }
   0x1   :  { %7 = vsyncpa [#allocation4], 0  ;;  %s13_s8 = sshll.u32 %s125_s0, 4  ;;  %s105_s9 = smov [#allocation2]   ;;  %s14_s8 = int_to_ptr.hbm [resolvable:$true] %s13_s8 }
   0x2   :  { %s15_s10 = sshll.u32 %s105_s9, 4  ;;  %s16_s10 = int_to_ptr.vmem [resolvable:$true] %s15_s10 }
   0x3   :  { %18 = dma.hbm_to_vmem [thread:$0]  %s14_s8, 32, %s16_s10, [#allocation3]  }
   0x4   :  { %101 = dma.done.wait [#allocation3], 32  }
   0x5   :  { %102 = vsyncadd [#allocation3], 4294967264  ;;  %v24_v0 = vlaneseq  ;;  %s106_s11 = smov [#allocation5]   ;;  %s36_s15 = sshll.u32 %s126_s1, 4  ;;  %v23_v1 = vld [vmem:[#allocation2] sm:$0x3]  ;;  %s37_s15 = int_to_ptr.hbm [resolvable:$true] %s36_s15 }
   0x6   :  { %s34_s12 = sshll.u32 %s106_s11, 4  ;;  %s107_s0 = smov 32   ;;  %s35_s12 = int_to_ptr.vmem [resolvable:$true] %s34_s12 }
   0x7   :  { %vm26_vm0 = vcmp.lt.s32.totalorder %v24_v0, 256  ;;  %s108_s16 = smov 2  }
   0x8   :  { %28 = vst.msk [vmem:[#allocation5] sm:$0x3] %vm26_vm0, %v23_v1 }
   0x9   :  { %29 = vst.msk [vmem:[#allocation5 + $0x2] sm:$0x3] %vm26_vm0, %v23_v1 }
   0xa   :  { %42 = dma.vmem_to_hbm [thread:$0]  %s35_s12, 64, %s37_s15, [#allocation4], %s107_s0, %s107_s0, %s108_s16  }
   0xb   :  { %103 = dma.done.wait [#allocation4], 64  }
   0xc   :  { %104 = vsyncadd [#allocation4], 4294967232 }
   0xd   :  { %47 = vsyncpa [#allocation3], 1 }
   0xe   :  { %48 = vsyncpa [#allocation4], 1 }

</bundles_post_ra>
